<compile_context>
chip_gen: v7x
topology: tpu7x:2x2x1
jax: 0.10.0
libtpu: 0.0.40
codegen_flags: <defaults>
</compile_context>

<pallas_src>
import numpy as np
import jax
import jax.numpy as jnp
from jax.experimental import pallas as pl
from jax.experimental.pallas import tpu as pltpu


def _cdiv(a, b):
    return (a + b - 1) // b


def _round_up(n, m):
    return _cdiv(n, m) * m


def _pool_weight_np(H, W, K, P):
    """Constant weight so that X[B, H*W] @ W2 == flattened avg_pool2d(X, K)."""
    def win(n):
        idx = np.arange(n)[:, None]                      # (n, 1)
        p = np.arange(P)[None, :]                        # (1, P)
        return np.where((idx >= p * K) & (idx < p * K + K),
                        1.0 / K, 0.0).astype(np.float32)  # (n, P), zero tail rows
    # W2[h*W + w, p*P + q] = row_pool[h, p] * col_pool[w, q]
    return np.kron(win(H), win(W))                        # (H*W, P*P)


def _chip_config():
    """Per-generation (batch-tile cap, scoped-VMEM limit, min grid steps)."""
    kind = ""
    try:
        kind = jax.devices()[0].device_kind.lower()
    except Exception:
        pass
    if "v7" in kind:                          # 64 MiB VMEM per TC, 2 TCs/chip
        return 4096, 48 << 20, 2
    if "v6" in kind:                          # 128 MiB VMEM, ~1.4 TB/s HBM
        return 8192, 80 << 20, 1
    if "v5 lite" in kind or "v5lite" in kind or "v5e" in kind:
        return 2048, 32 << 20, 1              # raise past the 16 MiB default scope
    return 2048, 32 << 20, 1                  # conservative default (v4/v5p/unknown)


def _pool_matmul_kernel(w_ref, x_ref, o_ref):
    # w_ref : (HW, PP)  constant pooling weight, VMEM-resident across grid steps
    # x_ref : (TB, HW)  batch tile of flattened images
    # o_ref : (TB, PP)  pooled outputs for this tile
    o_ref[...] = jnp.dot(
        x_ref[...], w_ref[...], preferred_element_type=jnp.float32
    ).astype(o_ref.dtype)


def img_filter_forward(x):
    """Pallas implementation of ImgFilter.forward.

    x: (B, 1, H, W) NCHW, float32 or bfloat16.  Returns (B, 1, 16) in x's
    compute dtype (bf16 stays bf16, everything else is computed in f32).
    """
    B, C, H, W = x.shape
    assert C == 1
    K = 6                                     # avg_pool2d kernel & stride
    P = (H - K) // K + 1                      # pooled spatial size (4 for H=28)
    HW, PP = H * W, P * P
    assert PP == 16, "forward() hard-codes a 16-element pooled output"

    # bf16 fast path: keep bf16 (halves HBM read traffic); otherwise f32.
    cdt = jnp.bfloat16 if x.dtype == jnp.bfloat16 else jnp.float32
    itemsize = jnp.dtype(cdt).itemsize
    x_flat = x.reshape(B, HW).astype(cdt)
    w2 = jnp.asarray(_pool_weight_np(H, W, K, P), dtype=cdt)   # baked constant

    # --- batch tiling --------------------------------------------------------
    tb_cap, vmem_limit, min_steps = _chip_config()
    B8 = _round_up(B, 8)
    n_steps = max(_cdiv(B8, tb_cap), 1)
    if min_steps > 1 and B8 >= min_steps * 8:      # engage both v7x TensorCores
        n_steps = max(n_steps, min_steps)
    TB = _round_up(_cdiv(B8, n_steps), 8)          # sublane-aligned batch tile
    grid = (_cdiv(B, TB),)                         # partial last block, no jnp.pad

    cost = pl.CostEstimate(
        flops=2 * B * HW * PP,
        transcendentals=0,
        bytes_accessed=B * HW * itemsize + B * PP * itemsize + HW * PP * itemsize,
    )
    compiler_params = pltpu.CompilerParams(
        dimension_semantics=("parallel",),
        vmem_limit_bytes=vmem_limit,
    )

    def build(weight_spec):
        return pl.pallas_call(
            _pool_matmul_kernel,
            out_shape=jax.ShapeDtypeStruct((B, PP), cdt),
            grid=grid,
            in_specs=[
                weight_spec,                                   # resident weight
                pl.BlockSpec((TB, HW), lambda b: (b, 0)),      # contiguous batch slab
            ],
            out_specs=pl.BlockSpec((TB, PP), lambda b: (b, 0)),
            compiler_params=compiler_params,
            cost_estimate=cost,
        )

    try:
        # Constant index_map -> double-buffering the weight is pure VMEM waste.
        w_spec = pl.BlockSpec((HW, PP), lambda b: (0, 0),
                              pipeline_mode=pl.Buffered(1))
        out = build(w_spec)(w2, x_flat)
    except Exception:
        # Fallback for JAX versions without pipeline_mode / Buffered(1) support.
        out = build(pl.BlockSpec((HW, PP), lambda b: (0, 0)))(w2, x_flat)

    # .view(B, 16).reshape(B, 1, -1) -> glue reshape in plain JAX.
    return out.reshape(B, 1, PP)


def _reference(x):
    # Pure-JAX reference for F.avg_pool2d(x, 6).view(B, 16).reshape(B, 1, -1)
    B, C, H, W = x.shape
    K = 6
    P = (H - K) // K + 1
    xc = x[:, :, : P * K, : P * K].reshape(B, C, P, K, P, K)
    return xc.mean(axis=(3, 5)).reshape(B, C, P * P)


if __name__ == "__main__":
    # TODO(synk): the nn.Sequential conv/BN/ReLU stack from __init__ is unused
    # by ImgFilter.forward() and is deliberately not implemented.
    key = jax.random.PRNGKey(0)
    x = jax.random.normal(key, (2, 1, 28, 28), dtype=jnp.float32)   # MNIST-like NCHW

    out = jax.block_until_ready(img_filter_forward(x))
    ref = _reference(x)
    assert out.shape == (2, 1, 16), out.shape
    assert jnp.allclose(out, ref, atol=1e-5, rtol=1e-5), "f32 mismatch vs reference"

    # bf16 fast path (half the HBM read traffic, f32 MXU accumulation).
    outb = jax.block_until_ready(img_filter_forward(x.astype(jnp.bfloat16)))
    assert outb.shape == (2, 1, 16), outb.shape
    assert jnp.allclose(outb.astype(jnp.float32), ref,
                        atol=5e-2, rtol=5e-2), "bf16 mismatch vs reference"

    print("KERNEL_OK")
</pallas_src>

<mosaic_0001>
module attributes {stable_mosaic.version = 11 : i64} {
  func.func @_pool_matmul_kernel(%arg0: i32, %arg1: memref<784x16xf32, #tpu.memory_space<vmem>>, %arg2: memref<8x784xf32, #tpu.memory_space<vmem>>, %arg3: memref<8x16xf32, #tpu.memory_space<vmem>>) attributes {dimension_semantics = [#tpu.dimension_semantics<parallel>], iteration_bounds = array<i64: 1>, scalar_prefetch = 0 : i64, scratch_operands = 0 : i64, tpu.core_type = #tpu.core_type<tc>, window_params = [{pipeline_mode = #tpu.pipeline_mode<synchronous>, transform_indices = @transform_0, window_bounds = array<i64: 784, 16>}, {transform_indices = @transform_1, window_bounds = array<i64: 8, 784>}, {transform_indices = @transform_2, window_bounds = array<i64: 8, 16>}]} {
    %c0 = arith.constant 0 : index
    %c0_0 = arith.constant 0 : index
    %0 = vector.load %arg2[%c0, %c0_0] : memref<8x784xf32, #tpu.memory_space<vmem>>, vector<8x784xf32>
    %c0_1 = arith.constant 0 : index
    %c0_2 = arith.constant 0 : index
    %1 = vector.load %arg1[%c0_1, %c0_2] : memref<784x16xf32, #tpu.memory_space<vmem>>, vector<784x16xf32>
    %cst = arith.constant dense<0.000000e+00> : vector<8x16xf32>
    %2 = tpu.matmul %0, %1, %cst {dimension_numbers = #tpu.dot_dimension_numbers<[1], [0], [0], [1], [0, 0, 1, 1], [], []>} : vector<8x784xf32>, vector<784x16xf32>, vector<8x16xf32> -> vector<8x16xf32>
    %c0_3 = arith.constant 0 : index
    %c0_4 = arith.constant 0 : index
    %3 = vector.load %arg3[%c0_3, %c0_4] : memref<8x16xf32, #tpu.memory_space<vmem>>, vector<8x16xf32>
    tpu.vector_store %arg3[%c0_3, %c0_4], %2 {strides = array<i32>} : memref<8x16xf32, #tpu.memory_space<vmem>>, vector<8x16xf32>,
    return
  }
  func.func @transform_0(%arg0: i32) -> (i32, i32) {
    %c0_i32 = arith.constant 0 : i32
    %c0_i32_0 = arith.constant 0 : i32
    %c0_i32_1 = arith.constant 0 : i32
    return %c0_i32, %c0_i32_0 : i32, i32
  }
  func.func @transform_1(%arg0: i32) -> (i32, i32) {
    %c0_i32 = arith.constant 0 : i32
    %c0_i32_0 = arith.constant 0 : i32
    return %arg0, %c0_i32 : i32, i32
  }
  func.func @transform_2(%arg0: i32) -> (i32, i32) {
    %c0_i32 = arith.constant 0 : i32
    %c0_i32_0 = arith.constant 0 : i32
    return %arg0, %c0_i32 : i32, i32
  }
}

module attributes {stable_mosaic.version = 11 : i64} {
  func.func @_pool_matmul_kernel(%arg0: i32, %arg1: memref<784x16xf32, #tpu.memory_space<vmem>>, %arg2: memref<8x784xf32, #tpu.memory_space<vmem>>, %arg3: memref<8x16xf32, #tpu.memory_space<vmem>>) attributes {dimension_semantics = [#tpu.dimension_semantics<parallel>], iteration_bounds = array<i64: 1>, scalar_prefetch = 0 : i64, scratch_operands = 0 : i64, tpu.core_type = #tpu.core_type<tc>, window_params = [{pipeline_mode = #tpu.pipeline_mode<synchronous>, transform_indices = @transform_0, window_bounds = array<i64: 784, 16>}, {transform_indices = @transform_1, window_bounds = array<i64: 8, 784>}, {transform_indices = @transform_2, window_bounds = array<i64: 8, 16>}]} {
    %c0 = arith.constant 0 : index
    %c0_0 = arith.constant 0 : index
    %0 = vector.load %arg2[%c0, %c0_0] : memref<8x784xf32, #tpu.memory_space<vmem>>, vector<8x784xf32>
    %c0_1 = arith.constant 0 : index
    %c0_2 = arith.constant 0 : index
    %1 = vector.load %arg1[%c0_1, %c0_2] : memref<784x16xf32, #tpu.memory_space<vmem>>, vector<784x16xf32>
    %cst = arith.constant dense<0.000000e+00> : vector<8x16xf32>
    %2 = tpu.matmul %0, %1, %cst {dimension_numbers = #tpu.dot_dimension_numbers<[1], [0], [0], [1], [0, 0, 1, 1], [], []>} : vector<8x784xf32>, vector<784x16xf32>, vector<8x16xf32> -> vector<8x16xf32>
    %c0_3 = arith.constant 0 : index
    %c0_4 = arith.constant 0 : index
    %3 = vector.load %arg3[%c0_3, %c0_4] : memref<8x16xf32, #tpu.memory_space<vmem>>, vector<8x16xf32>
    tpu.vector_store %arg3[%c0_3, %c0_4], %2 {strides = array<i32>} : memref<8x16xf32, #tpu.memory_space<vmem>>, vector<8x16xf32>,
    return
  }
  func.func @transform_0(%arg0: i32) -> (i32, i32) {
    %c0_i32 = arith.constant 0 : i32
    %c0_i32_0 = arith.constant 0 : i32
    %c0_i32_1 = arith.constant 0 : i32
    return %c0_i32, %c0_i32_0 : i32, i32
  }
  func.func @transform_1(%arg0: i32) -> (i32, i32) {
    %c0_i32 = arith.constant 0 : i32
    %c0_i32_0 = arith.constant 0 : i32
    return %arg0, %c0_i32 : i32, i32
  }
  func.func @transform_2(%arg0: i32) -> (i32, i32) {
    %c0_i32 = arith.constant 0 : i32
    %c0_i32_0 = arith.constant 0 : i32
    return %arg0, %c0_i32 : i32, i32
  }
}

</mosaic_0001>

<bundles_post_ra>
// kernel: tpu_custom_call.1
= control target key start
LH: loop header
LB: loop body
LE: loop exit
PB: predicated region body
PF: predicated region fallthrough
CT: control target
= control target key end

     0   :  { %7 = vsyncpa [#allocation3], 0  ;;  %v761_v54 = vmov 1983009808   ;;  %v133_v56 = vlaneseq  ;;  %vm763_vm0 = vmmov 0   ;;  %vm203_vm1 = vcmask 130048   ;;  %s1125_s0 = inlined_call_operand.vmem [shape: f32[784,16], index: 0, kind: input, shape index: {}]   ;;  %s1126_s1 = inlined_call_operand.vmem [shape: f32[2,784], index: 1, kind: input, shape index: {}]   ;;  %s1127_s2 = inlined_call_operand.hbm [shape: f32[2,16], index: 2, kind: output, shape index: {}]  }
   0x1   :  { %v36_v0 = vld [vmem:[%s1125_s0 + $0x80] sm:$0xff]  ;;  %v37_v1 = vld [vmem:[%s1125_s0 + $0x88] sm:$0xff]  ;;  %v38_v12 = vld [vmem:[%s1125_s0 + $0x90] sm:$0xff]  ;;  %v131_v55 = vunpack.c.l.s4 %v761_v54 }
   0x2   :  { %v619_v2 = vpack.c.bf16 %v37_v1, %v36_v0  ;;  %v68_v3 = vld [vmem:[%s1125_s0 + $0x180] sm:$0xff]  ;;  %v69_v4 = vld [vmem:[%s1125_s0 + $0x188] sm:$0xff]  ;;  %v39_v13 = vld [vmem:[%s1125_s0 + $0x98] sm:$0xff] }
   0x3   :  { %v20_v5 = vld [vmem:[%s1125_s0] sm:$0xff]  ;;  %v651_v6 = vpack.c.bf16 %v69_v4, %v68_v3  ;;  %v21_v7 = vld [vmem:[%s1125_s0 + $0x8] sm:$0xff]  ;;  %v70_v14 = vld [vmem:[%s1125_s0 + $0x190] sm:$0xff]  ;;  %v623_v15 = vpack.c.bf16 %v39_v13, %v38_v12 }
   0x4   :  { %v52_v8 = vld [vmem:[%s1125_s0 + $0x100] sm:$0xff]  ;;  %v53_v9 = vld [vmem:[%s1125_s0 + $0x108] sm:$0xff]  ;;  %620 = vmatprep.subr.bf16.mxu0 %v619_v2  ;;  %v621_v10 = vpack.c.bf16 %v21_v7, %v20_v5  ;;  %v71_v16 = vld [vmem:[%s1125_s0 + $0x198] sm:$0xff]  ;;  %v134_v7 = vshrl.u32 %v133_v56, 7 }
   0x5   :  { %v653_v11 = vpack.c.bf16 %v53_v9, %v52_v8  ;;  %652 = vmatprep.subr.bf16.mxu1 %v651_v6  ;;  %v22_v17 = vld [vmem:[%s1125_s0 + $0x10] sm:$0xff]  ;;  %v23_v18 = vld [vmem:[%s1125_s0 + $0x18] sm:$0xff]  ;;  %v655_v19 = vpack.c.bf16 %v71_v16, %v70_v14  ;;  %v40_v23 = vld [vmem:[%s1125_s0 + $0xa0] sm:$0xff]  ;;  %v132_v6 = vunpack.c.0.s8 %v131_v55 }
   0x6   :  { %622 = vmatpush3.bf16.msra.mxu0 %v621_v10  ;;  %v625_v20 = vpack.c.bf16 %v23_v18, %v22_v17  ;;  %v54_v21 = vld [vmem:[%s1125_s0 + $0x110] sm:$0xff]  ;;  %v55_v22 = vld [vmem:[%s1125_s0 + $0x118] sm:$0xff]  ;;  %v41_v25 = vld [vmem:[%s1125_s0 + $0xa8] sm:$0xff] }
   0x7   :  { %654 = vmatpush3.bf16.msra.mxu1 %v653_v11  ;;  %624 = vmatprep.subr.bf16.mxu0 %v623_v15  ;;  %v657_v24 = vpack.c.bf16 %v55_v22, %v54_v21  ;;  %v72_v26 = vld [vmem:[%s1125_s0 + $0x1a0] sm:$0xff]  ;;  %v73_v27 = vld [vmem:[%s1125_s0 + $0x1a8] sm:$0xff]  ;;  %v627_v28 = vpack.c.bf16 %v41_v25, %v40_v23  ;;  %v42_v34 = vld [vmem:[%s1125_s0 + $0xb0] sm:$0xff]  ;;  %v963_v25 = vsub.s32 %v132_v6, %v134_v7  ;;  %v764_v6 = vmov 0.0  }
   0x8   :  { %656 = vmatprep.subr.bf16.mxu1 %v655_v19  ;;  %v659_v29 = vpack.c.bf16 %v73_v27, %v72_v26  ;;  %v24_v30 = vld [vmem:[%s1125_s0 + $0x20] sm:$0xff]  ;;  %v25_v31 = vld [vmem:[%s1125_s0 + $0x28] sm:$0xff]  ;;  %v43_v35 = vld [vmem:[%s1125_s0 + $0xb8] sm:$0xff] }
   0x9   :  { %v56_v32 = vld [vmem:[%s1125_s0 + $0x120] sm:$0xff]  ;;  %v57_v33 = vld [vmem:[%s1125_s0 + $0x128] sm:$0xff]  ;;  %v629_v36 = vpack.c.bf16 %v25_v31, %v24_v30  ;;  %v74_v38 = vld [vmem:[%s1125_s0 + $0x1b0] sm:$0xff]  ;;  %v631_v41 = vpack.c.bf16 %v43_v35, %v42_v34 }
   0xa   :  { %626 = vmatpush3.bf16.msra.mxu0 %v625_v20  ;;  %v661_v37 = vpack.c.bf16 %v57_v33, %v56_v32  ;;  %v75_v39 = vld [vmem:[%s1125_s0 + $0x1b8] sm:$0xff]  ;;  %v26_v40 = vld [vmem:[%s1125_s0 + $0x30] sm:$0xff]  ;;  %v44_v46 = vld [vmem:[%s1125_s0 + $0xc0] sm:$0xff] }
   0xb   :  { %658 = vmatpush3.bf16.msra.mxu1 %v657_v24  ;;  %628 = vmatprep.subr.bf16.mxu0 %v627_v28  ;;  %v663_v42 = vpack.c.bf16 %v75_v39, %v74_v38  ;;  %v27_v43 = vld [vmem:[%s1125_s0 + $0x38] sm:$0xff]  ;;  %v58_v44 = vld [vmem:[%s1125_s0 + $0x130] sm:$0xff]  ;;  %v45_v47 = vld [vmem:[%s1125_s0 + $0xc8] sm:$0xff] }
   0xc   :  { %660 = vmatprep.subr.bf16.mxu1 %v659_v29  ;;  %v59_v45 = vld [vmem:[%s1125_s0 + $0x138] sm:$0xff]  ;;  %v76_v48 = vld [vmem:[%s1125_s0 + $0x1c0] sm:$0xff]  ;;  %v77_v49 = vld [vmem:[%s1125_s0 + $0x1c8] sm:$0xff]  ;;  %v633_v50 = vpack.c.bf16 %v27_v43, %v26_v40  ;;  %v635_v57 = vpack.c.bf16 %v45_v47, %v44_v46 }
   0xd   :  { %v665_v51 = vpack.c.bf16 %v59_v45, %v58_v44  ;;  %v28_v52 = vld [vmem:[%s1125_s0 + $0x40] sm:$0xff]  ;;  %v29_v53 = vld [vmem:[%s1125_s0 + $0x48] sm:$0xff]  ;;  %v667_v58 = vpack.c.bf16 %v77_v49, %v76_v48  ;;  %v46_v61 = vld [vmem:[%s1125_s0 + $0xd0] sm:$0xff] }
   0xe   :  { %630 = vmatpush3.bf16.msra.mxu0 %v629_v36  ;;  %v60_v59 = vld [vmem:[%s1125_s0 + $0x140] sm:$0xff]  ;;  %v61_v60 = vld [vmem:[%s1125_s0 + $0x148] sm:$0xff]  ;;  %v47_v62 = vld [vmem:[%s1125_s0 + $0xd8] sm:$0xff]  ;;  %v637_v1 = vpack.c.bf16 %v29_v53, %v28_v52 }
   0xf   :  { %662 = vmatpush3.bf16.msra.mxu1 %v661_v37  ;;  %632 = vmatprep.subr.bf16.mxu0 %v631_v41  ;;  %v78_v63 = vld [vmem:[%s1125_s0 + $0x1d0] sm:$0xff]  ;;  %v79_v0 = vld [vmem:[%s1125_s0 + $0x1d8] sm:$0xff]  ;;  %v669_v2 = vpack.c.bf16 %v61_v60, %v60_v59  ;;  %v639_v8 = vpack.c.bf16 %v47_v62, %v46_v61  ;;  %v48_v11 = vld [vmem:[%s1125_s0 + $0xe0] sm:$0xff] }
  0x10   :  { %664 = vmatprep.subr.bf16.mxu1 %v663_v42  ;;  %v30_v3 = vld [vmem:[%s1125_s0 + $0x50] sm:$0xff]  ;;  %v31_v4 = vld [vmem:[%s1125_s0 + $0x58] sm:$0xff]  ;;  %v671_v9 = vpack.c.bf16 %v79_v0, %v78_v63  ;;  %v49_v12 = vld [vmem:[%s1125_s0 + $0xe8] sm:$0xff]  ;;  %v762_v63 = vmov 0.0|0.0  }
  0x11   :  { %v62_v5 = vld [vmem:[%s1125_s0 + $0x150] sm:$0xff]  ;;  %v63_v10 = vld [vmem:[%s1125_s0 + $0x158] sm:$0xff]  ;;  %v80_v13 = vld [vmem:[%s1125_s0 + $0x1e0] sm:$0xff]  ;;  %v641_v19 = vpack.c.bf16 %v31_v4, %v30_v3  ;;  %v643_v26 = vpack.c.bf16 %v49_v12, %v48_v11 }
  0x12   :  { %634 = vmatpush3.bf16.msra.mxu0 %v633_v50  ;;  %v81_v14 = vld [vmem:[%s1125_s0 + $0x1e8] sm:$0xff]  ;;  %v32_v15 = vld [vmem:[%s1125_s0 + $0x60] sm:$0xff]  ;;  %v673_v20 = vpack.c.bf16 %v63_v10, %v62_v5  ;;  %v50_v21 = vld [vmem:[%s1125_s0 + $0xf0] sm:$0xff] }
  0x13   :  { %666 = vmatpush3.bf16.msra.mxu1 %v665_v51  ;;  %636 = vmatprep.subr.bf16.mxu0 %v635_v57  ;;  %v33_v16 = vld [vmem:[%s1125_s0 + $0x68] sm:$0xff]  ;;  %v64_v17 = vld [vmem:[%s1125_s0 + $0x160] sm:$0xff]  ;;  %v51_v22 = vld [vmem:[%s1125_s0 + $0xf8] sm:$0xff]  ;;  %v675_v27 = vpack.c.bf16 %v81_v14, %v80_v13 }
  0x14   :  { %668 = vmatprep.subr.bf16.mxu1 %v667_v58  ;;  %v65_v18 = vld [vmem:[%s1125_s0 + $0x168] sm:$0xff]  ;;  %v82_v23 = vld [vmem:[%s1125_s0 + $0x1f0] sm:$0xff]  ;;  %v83_v24 = vld [vmem:[%s1125_s0 + $0x1f8] sm:$0xff]  ;;  %v645_v31 = vpack.c.bf16 %v33_v16, %v32_v15  ;;  %v647_v38 = vpack.c.bf16 %v51_v22, %v50_v21 }
  0x15   :  { %v725_v28 = vld [vmem:[%s1126_s1] ss:$14 sps:$4 sm:$0xff]   ;;  %v727_v29 = vld [vmem:[%s1126_s1 + $0x1c] ss:$14 sps:$4 sm:$0xff]   ;;  %v729_v30 = vld [vmem:[%s1126_s1 + $0x4] ss:$14 sps:$4 sm:$0xff]   ;;  %v677_v32 = vpack.c.bf16 %v65_v18, %v64_v17  ;;  %v679_v39 = vpack.c.bf16 %v83_v24, %v82_v23 }
  0x16   :  { %638 = vmatpush3.bf16.msra.mxu0 %v637_v1  ;;  %v730_v33 = vld [vmem:[%s1126_s1 + $0x20] ss:$14 sps:$4 sm:$0xff]   ;;  %v136_v35 = vrot.slane %v725_v28, %v963_v25  ;;  %v150_v36 = vrot.slane %v727_v29, %v963_v25  ;;  %v143_v37 = vrot.slane %v729_v30, %v963_v25  ;;  %v35_v40 = vld [vmem:[%s1125_s0 + $0x78] sm:$0xff]  ;;  %v736_v5 = vld [vmem:[%s1126_s1 + $0x28] ss:$14 sps:$4 sm:$0x33]  }
  0x17   :  { %670 = vmatpush3.bf16.msra.mxu1 %v669_v2  ;;  %640 = vmatprep.subr.bf16.mxu0 %v639_v8  ;;  %v34_v34 = vld [vmem:[%s1125_s0 + $0x70] sm:$0xff]  ;;  %v67_v42 = vld [vmem:[%s1125_s0 + $0x178] sm:$0xff]  ;;  %v157_v43 = vrot.slane %v730_v33, %v963_v25  ;;  %v100_v45 = vld [vmem:[%s1125_s0 + $0x280] sm:$0xff]  ;;  %v193_v16 = vrot.slane %v736_v5, %v963_v25 }
  0x18   :  { %672 = vmatprep.subr.bf16.mxu1 %v671_v9  ;;  %v66_v41 = vld [vmem:[%s1125_s0 + $0x170] sm:$0xff]  ;;  %v159_v44 = vcombine.high %v136_v35, %v150_v36  ;;  %v101_v46 = vld [vmem:[%s1125_s0 + $0x288] sm:$0xff]  ;;  %v649_v48 = vpack.c.bf16 %v35_v40, %v34_v34  ;;  %v84_v51 = vld [vmem:[%s1125_s0 + $0x200] sm:$0xff]  ;;  %v158_v55 = vcombine.low %v136_v35, %v150_v36 }
  0x19   :  { %v161_v47 = vcombine.high %v143_v37, %v157_v43  ;;  %v681_v49 = vpack.c.bf16 %v67_v42, %v66_v41  ;;  %v683_v50 = vpack.c.bf16 %v101_v46, %v100_v45  ;;  %v85_v52 = vld [vmem:[%s1125_s0 + $0x208] sm:$0xff]  ;;  %v102_v53 = vld [vmem:[%s1125_s0 + $0x290] sm:$0xff]  ;;  %v103_v54 = vld [vmem:[%s1125_s0 + $0x298] sm:$0xff]  ;;  %v160_v56 = vcombine.low %v143_v37, %v157_v43 }
  0x1a   :  { %642 = vmatpush3.bf16.msra.mxu0 %v641_v19  ;;  %270 = vmatprep.mubr.f32.mxu0 %v159_v44  ;;  %v685_v57 = vpack.c.bf16 %v85_v52, %v84_v51  ;;  %v86_v58 = vld [vmem:[%s1125_s0 + $0x210] sm:$0xff]  ;;  %v687_v59 = vpack.c.bf16 %v103_v54, %v102_v53  ;;  %v87_v60 = vld [vmem:[%s1125_s0 + $0x218] sm:$0xff]  ;;  %v104_v61 = vld [vmem:[%s1125_s0 + $0x2a0] sm:$0xff] }
  0x1b   :  { %674 = vmatpush3.bf16.msra.mxu1 %v673_v20  ;;  %644 = vmatprep.subr.bf16.mxu0 %v643_v26  ;;  %v105_v62 = vld [vmem:[%s1125_s0 + $0x2a8] sm:$0xff]  ;;  %v88_v0 = vld [vmem:[%s1125_s0 + $0x220] sm:$0xff]  ;;  %v689_v3 = vpack.c.bf16 %v87_v60, %v86_v58  ;;  %v106_v13 = vld [vmem:[%s1125_s0 + $0x2b0] sm:$0xff] }
  0x1c   :  { %676 = vmatprep.subr.bf16.mxu1 %v675_v27  ;;  %340 = vmatprep.mubr.f32.mxu1 %v161_v47  ;;  %v731_v1 = vld [vmem:[%s1126_s1 + $0x8] ss:$14 sps:$4 sm:$0xff]   ;;  %v734_v2 = vld [vmem:[%s1126_s1 + $0x24] ss:$14 sps:$4 sm:$0xff]   ;;  %v691_v7 = vpack.c.bf16 %v105_v62, %v104_v61 }
  0x1d   :  { %v733_v4 = vld [vmem:[%s1126_s1 + $0xc] ss:$14 sps:$4 sm:$0x33]   ;;  %v172_v9 = vrot.slane %v731_v1, %v963_v25  ;;  %v186_v10 = vrot.slane %v734_v2, %v963_v25  ;;  %v116_v11 = vld [vmem:[%s1125_s0 + $0x300] sm:$0xff]  ;;  %v90_v22 = vld [vmem:[%s1125_s0 + $0x230] sm:$0xff] }
  0x1e   :  { %646 = vmatpush3.bf16.msra.mxu0 %v645_v31  ;;  %v89_v8 = vld [vmem:[%s1125_s0 + $0x228] sm:$0xff]  ;;  %v107_v14 = vld [vmem:[%s1125_s0 + $0x2b8] sm:$0xff]  ;;  %v179_v15 = vrot.slane %v733_v4, %v963_v25  ;;  %v108_v24 = vld [vmem:[%s1125_s0 + $0x2c0] sm:$0xff] }
  0x1f   :  { %678 = vmatpush3.bf16.msra.mxu1 %v677_v32  ;;  %648 = vmatprep.subr.bf16.mxu0 %v647_v38  ;;  %v117_v12 = vld [vmem:[%s1125_s0 + $0x308] sm:$0xff]  ;;  %v195_v18 = vcombine.high %v172_v9, %v186_v10  ;;  %v693_v19 = vpack.c.bf16 %v89_v8, %v88_v0  ;;  %v695_v21 = vpack.c.bf16 %v107_v14, %v106_v13  ;;  %v91_v23 = vld [vmem:[%s1125_s0 + $0x238] sm:$0xff]  ;;  %v92_v28 = vld [vmem:[%s1125_s0 + $0x240] sm:$0xff] }
  0x20   :  { %680 = vmatprep.subr.bf16.mxu1 %v679_v39  ;;  %v716_v17 = vpack.c.bf16 %v117_v12, %v116_v11  ;;  %v196_v20 = vcombine.low %v179_v15, %v193_v16  ;;  %v109_v25 = vld [vmem:[%s1125_s0 + $0x2c8] sm:$0xff]  ;;  %v697_v26 = vpack.c.bf16 %v91_v23, %v90_v22  ;;  %v110_v30 = vld [vmem:[%s1125_s0 + $0x2d0] sm:$0xff]  ;;  %v111_v31 = vld [vmem:[%s1125_s0 + $0x2d8] sm:$0xff] }
  0x21   :  { %v699_v27 = vpack.c.bf16 %v109_v25, %v108_v24  ;;  %v93_v29 = vld [vmem:[%s1125_s0 + $0x248] sm:$0xff]  ;;  %v703_v33 = vpack.c.bf16 %v111_v31, %v110_v30  ;;  %v94_v34 = vld [vmem:[%s1125_s0 + $0x250] sm:$0xff]  ;;  %v95_v35 = vld [vmem:[%s1125_s0 + $0x258] sm:$0xff] }
  0x22   :  { %650 = vmatpush3.bf16.msra.mxu0 %v649_v48  ;;  %v701_v32 = vpack.c.bf16 %v93_v29, %v92_v28  ;;  %v112_v36 = vld [vmem:[%s1125_s0 + $0x2e0] sm:$0xff]  ;;  %v113_v37 = vld [vmem:[%s1125_s0 + $0x2e8] sm:$0xff]  ;;  %v705_v38 = vpack.c.bf16 %v95_v35, %v94_v34  ;;  %v114_v42 = vld [vmem:[%s1125_s0 + $0x2f0] sm:$0xff] }
  0x23   :  { %682 = vmatpush3.bf16.msra.mxu1 %v681_v49  ;;  %684 = vmatprep.subr.bf16.mxu0 %v683_v50  ;;  %v707_v39 = vpack.c.bf16 %v113_v37, %v112_v36  ;;  %v96_v40 = vld [vmem:[%s1125_s0 + $0x260] sm:$0xff]  ;;  %v97_v41 = vld [vmem:[%s1125_s0 + $0x268] sm:$0xff]  ;;  %v115_v43 = vld [vmem:[%s1125_s0 + $0x2f8] sm:$0xff]  ;;  %v194_v49 = vcombine.low %v172_v9, %v186_v10 }
  0x24   :  { %715 = vmatprep.subr.bf16.mxu1 %v762_v63  ;;  %v709_v44 = vpack.c.bf16 %v97_v41, %v96_v40  ;;  %v711_v45 = vpack.c.bf16 %v115_v43, %v114_v42  ;;  %v98_v46 = vld [vmem:[%s1125_s0 + $0x270] sm:$0xff]  ;;  %v99_v47 = vld [vmem:[%s1125_s0 + $0x278] sm:$0xff] }
  0x25   :  { %271 = vmatmul.mubr.f32.vlgmr.msra.gmra.mrb[0].mxu0 %v158_v55  ;;  %v713_v48 = vpack.c.bf16 %v99_v47, %v98_v46 }
  0x26   :  { %341 = vmatmul.mubr.f32.vlgmr.msra.gmra.mrb[0].mxu1 %v160_v56  ;;  %686 = vmatpush3.bf16.msra.mxu0 %v685_v57 }
  0x27   :  { %616 = vmatprep.mubr.msk.f32.mxu1 %vm763_vm0, %v764_v6  ;;  %688 = vmatprep.subr.bf16.mxu0 %v687_v59 }
  0x28   :  { %717 = vmatpush3.bf16.msra.mxu1 %v716_v17  ;;  %410 = vmatprep.mubr.f32.mxu0 %v195_v18 }
  0x2a   :  { %690 = vmatpush3.bf16.msra.mxu0 %v689_v3 }
  0x2b   :  { %692 = vmatprep.subr.bf16.mxu0 %v691_v7  ;;  %617 = vmatmul.mubr.msk.f32.vlgmr.msra.gmra.mrb[2].mxu1 %vm203_vm1, %v196_v20 }
  0x2e   :  { %694 = vmatpush3.bf16.msra.mxu0 %v693_v19 }
  0x2f   :  { %696 = vmatprep.subr.bf16.mxu0 %v695_v21 }
  0x32   :  { %698 = vmatpush3.bf16.msra.mxu0 %v697_v26 }
  0x33   :  { %700 = vmatprep.subr.bf16.mxu0 %v699_v27 }
  0x36   :  { %702 = vmatpush3.bf16.msra.mxu0 %v701_v32 }
  0x37   :  { %704 = vmatprep.subr.bf16.mxu0 %v703_v33 }
  0x3a   :  { %706 = vmatpush3.bf16.msra.mxu0 %v705_v38 }
  0x3b   :  { %708 = vmatprep.subr.bf16.mxu0 %v707_v39 }
  0x3e   :  { %710 = vmatpush3.bf16.msra.mxu0 %v709_v44 }
  0x3f   :  { %712 = vmatprep.subr.bf16.mxu0 %v711_v45 }
  0x42   :  { %714 = vmatpush3.bf16.msra.mxu0 %v713_v48 }
  0x45   :  { %411 = vmatmul.mubr.f32.vlgmr.msra.gmra.mrb[2].mxu0 %v194_v49 }
  0xf8   :  { %v536_v50 = vpop.f32.mrb[0].mxu0 }
  0xf9   :  { %v571_v51 = vpop.f32.mrb[0].mxu1  ;;  %v537_v52 = vpop.f32.mrb[1].mxu0 }
  0xfa   :  { %v572_v53 = vpop.f32.mrb[1].mxu1  ;;  %v538_v54 = vadd.f32 %v537_v52, %v536_v50 }
  0xfb   :  { %v573_v55 = vadd.f32 %v572_v53, %v571_v51 }
  0xfd   :  { %v343_v56 = vadd.f32 %v573_v55, %v538_v54 }
  0xfe   :  { %v482_v57 = vpop.f32.mrb[2].mxu1 }
  0xff   :  { %v618_v58 = vpop.f32.mrb[3].mxu1 }
 0x118   :  { %v606_v59 = vpop.f32.mrb[2].mxu0 }
 0x119   :  { %v607_v60 = vpop.f32.mrb[3].mxu0 }
 0x11a   :  { %v608_v61 = vadd.f32 %v607_v60, %v606_v59 }
 0x11c   :  { %v413_v62 = vadd.f32 %v608_v61, %v343_v56 }
 0x11e   :  { %v483_v63 = vadd.f32 %v482_v57, %v413_v62 }
 0x120   :  { %486 = vst.msk [vmem:[#allocation2] sm:$0xff] %vm203_vm1, %v483_v63 }
 0x121   :  { %491 = vsyncadd [#allocation3], 96  ;;  %s765_s0 = smov [#allocation2]  }
 0x122   :  { %s492_s23 = sshll.u32 %s765_s0, 4  ;;  %s493_s23 = int_to_ptr.vmem [resolvable:$true] %s492_s23 }
 0x123   :  { %s737_s24 = scalar_lea.vmem %s493_s23, 32  ;;  %s741_s25 = scalar_lea.vmem %s493_s23, 128 }
 0x124   :  { %p738_p0 = scmp.ne.s32.totalorder %s493_s23, %s737_s24  ;;  %p742_p1 = scmp.lt.s32.totalorder %s493_s23, %s493_s23 }
 0x125   :  { %p743_p2 = scmp.lt.s32.totalorder %s741_s25, %s737_s24 }
 0x127   :  { %p744_p3 = por %p743_p2, %p742_p1 }
 0x129   :  { %p745_p4 = pnand %p744_p3, %p738_p0 }
 0x12b   :  { %748 = shalt.err (!%p745_p4)
}
 0x12c   :  { %s749_s28 = scalar_lea.hbm %s1127_s2, 32 }
 0x12d   :  { %p750_p5 = scmp.ne.s32.totalorder %s1127_s2, %s749_s28  ;;  %p753_p6 = scmp.lt.u32.totalorder %s749_s28, %s1127_s2 }
 0x12f   :  { %p755_p7 = pnand %p753_p6, %p750_p5 }
 0x131   :  { %758 = shalt.err (!%p755_p7)
}
 0x132   :  { %s766_s5 = smov 32   ;;  %s767_s6 = smov 2  }
 0x133   :  { %498 = dma.vmem_to_hbm [thread:$0]  %s493_s23, 32, %s1127_s2, [#allocation3], %s766_s5, %s766_s5, %s767_s6  }
 0x134   :  { %759 = dma.done.wait [#allocation3], 128  }
 0x135   :  { %760 = vsyncadd [#allocation3], 4294967168 }
 0x136   :  { %502 = vsyncpa [#allocation3], 1 }

// kernel: tpu_custom_call.1
= control target key start
LH: loop header
LB: loop body
LE: loop exit
PB: predicated region body
PF: predicated region fallthrough
CT: control target
= control target key end

     0   :  { %7 = vsyncpa [#allocation3], 0  ;;  %v761_v54 = vmov 1983009808   ;;  %v133_v56 = vlaneseq  ;;  %vm763_vm0 = vmmov 0   ;;  %vm203_vm1 = vcmask 130048   ;;  %s1125_s0 = inlined_call_operand.vmem [shape: f32[784,16], index: 0, kind: input, shape index: {}]   ;;  %s1126_s1 = inlined_call_operand.vmem [shape: f32[2,784], index: 1, kind: input, shape index: {}]   ;;  %s1127_s2 = inlined_call_operand.hbm [shape: f32[2,16], index: 2, kind: output, shape index: {}]  }
   0x1   :  { %v36_v0 = vld [vmem:[%s1125_s0 + $0x80] sm:$0xff]  ;;  %v37_v1 = vld [vmem:[%s1125_s0 + $0x88] sm:$0xff]  ;;  %v38_v12 = vld [vmem:[%s1125_s0 + $0x90] sm:$0xff]  ;;  %v131_v55 = vunpack.c.l.s4 %v761_v54 }
   0x2   :  { %v619_v2 = vpack.c.bf16 %v37_v1, %v36_v0  ;;  %v68_v3 = vld [vmem:[%s1125_s0 + $0x180] sm:$0xff]  ;;  %v69_v4 = vld [vmem:[%s1125_s0 + $0x188] sm:$0xff]  ;;  %v39_v13 = vld [vmem:[%s1125_s0 + $0x98] sm:$0xff] }
   0x3   :  { %v20_v5 = vld [vmem:[%s1125_s0] sm:$0xff]  ;;  %v651_v6 = vpack.c.bf16 %v69_v4, %v68_v3  ;;  %v21_v7 = vld [vmem:[%s1125_s0 + $0x8] sm:$0xff]  ;;  %v70_v14 = vld [vmem:[%s1125_s0 + $0x190] sm:$0xff]  ;;  %v623_v15 = vpack.c.bf16 %v39_v13, %v38_v12 }
   0x4   :  { %v52_v8 = vld [vmem:[%s1125_s0 + $0x100] sm:$0xff]  ;;  %v53_v9 = vld [vmem:[%s1125_s0 + $0x108] sm:$0xff]  ;;  %620 = vmatprep.subr.bf16.mxu0 %v619_v2  ;;  %v621_v10 = vpack.c.bf16 %v21_v7, %v20_v5  ;;  %v71_v16 = vld [vmem:[%s1125_s0 + $0x198] sm:$0xff]  ;;  %v134_v7 = vshrl.u32 %v133_v56, 7 }
   0x5   :  { %v653_v11 = vpack.c.bf16 %v53_v9, %v52_v8  ;;  %652 = vmatprep.subr.bf16.mxu1 %v651_v6  ;;  %v22_v17 = vld [vmem:[%s1125_s0 + $0x10] sm:$0xff]  ;;  %v23_v18 = vld [vmem:[%s1125_s0 + $0x18] sm:$0xff]  ;;  %v655_v19 = vpack.c.bf16 %v71_v16, %v70_v14  ;;  %v40_v23 = vld [vmem:[%s1125_s0 + $0xa0] sm:$0xff]  ;;  %v132_v6 = vunpack.c.0.s8 %v131_v55 }
   0x6   :  { %622 = vmatpush3.bf16.msra.mxu0 %v621_v10  ;;  %v625_v20 = vpack.c.bf16 %v23_v18, %v22_v17  ;;  %v54_v21 = vld [vmem:[%s1125_s0 + $0x110] sm:$0xff]  ;;  %v55_v22 = vld [vmem:[%s1125_s0 + $0x118] sm:$0xff]  ;;  %v41_v25 = vld [vmem:[%s1125_s0 + $0xa8] sm:$0xff] }
   0x7   :  { %654 = vmatpush3.bf16.msra.mxu1 %v653_v11  ;;  %624 = vmatprep.subr.bf16.mxu0 %v623_v15  ;;  %v657_v24 = vpack.c.bf16 %v55_v22, %v54_v21  ;;  %v72_v26 = vld [vmem:[%s1125_s0 + $0x1a0] sm:$0xff]  ;;  %v73_v27 = vld [vmem:[%s1125_s0 + $0x1a8] sm:$0xff]  ;;  %v627_v28 = vpack.c.bf16 %v41_v25, %v40_v23  ;;  %v42_v34 = vld [vmem:[%s1125_s0 + $0xb0] sm:$0xff]  ;;  %v963_v25 = vsub.s32 %v132_v6, %v134_v7  ;;  %v764_v6 = vmov 0.0  }
   0x8   :  { %656 = vmatprep.subr.bf16.mxu1 %v655_v19  ;;  %v659_v29 = vpack.c.bf16 %v73_v27, %v72_v26  ;;  %v24_v30 = vld [vmem:[%s1125_s0 + $0x20] sm:$0xff]  ;;  %v25_v31 = vld [vmem:[%s1125_s0 + $0x28] sm:$0xff]  ;;  %v43_v35 = vld [vmem:[%s1125_s0 + $0xb8] sm:$0xff] }
   0x9   :  { %v56_v32 = vld [vmem:[%s1125_s0 + $0x120] sm:$0xff]  ;;  %v57_v33 = vld [vmem:[%s1125_s0 + $0x128] sm:$0xff]  ;;  %v629_v36 = vpack.c.bf16 %v25_v31, %v24_v30  ;;  %v74_v38 = vld [vmem:[%s1125_s0 + $0x1b0] sm:$0xff]  ;;  %v631_v41 = vpack.c.bf16 %v43_v35, %v42_v34 }
   0xa   :  { %626 = vmatpush3.bf16.msra.mxu0 %v625_v20  ;;  %v661_v37 = vpack.c.bf16 %v57_v33, %v56_v32  ;;  %v75_v39 = vld [vmem:[%s1125_s0 + $0x1b8] sm:$0xff]  ;;  %v26_v40 = vld [vmem:[%s1125_s0 + $0x30] sm:$0xff]  ;;  %v44_v46 = vld [vmem:[%s1125_s0 + $0xc0] sm:$0xff] }
   0xb   :  { %658 = vmatpush3.bf16.msra.mxu1 %v657_v24  ;;  %628 = vmatprep.subr.bf16.mxu0 %v627_v28  ;;  %v663_v42 = vpack.c.bf16 %v75_v39, %v74_v38  ;;  %v27_v43 = vld [vmem:[%s1125_s0 + $0x38] sm:$0xff]  ;;  %v58_v44 = vld [vmem:[%s1125_s0 + $0x130] sm:$0xff]  ;;  %v45_v47 = vld [vmem:[%s1125_s0 + $0xc8] sm:$0xff] }
   0xc   :  { %660 = vmatprep.subr.bf16.mxu1 %v659_v29  ;;  %v59_v45 = vld [vmem:[%s1125_s0 + $0x138] sm:$0xff]  ;;  %v76_v48 = vld [vmem:[%s1125_s0 + $0x1c0] sm:$0xff]  ;;  %v77_v49 = vld [vmem:[%s1125_s0 + $0x1c8] sm:$0xff]  ;;  %v633_v50 = vpack.c.bf16 %v27_v43, %v26_v40  ;;  %v635_v57 = vpack.c.bf16 %v45_v47, %v44_v46 }
   0xd   :  { %v665_v51 = vpack.c.bf16 %v59_v45, %v58_v44  ;;  %v28_v52 = vld [vmem:[%s1125_s0 + $0x40] sm:$0xff]  ;;  %v29_v53 = vld [vmem:[%s1125_s0 + $0x48] sm:$0xff]  ;;  %v667_v58 = vpack.c.bf16 %v77_v49, %v76_v48  ;;  %v46_v61 = vld [vmem:[%s1125_s0 + $0xd0] sm:$0xff] }
   0xe   :  { %630 = vmatpush3.bf16.msra.mxu0 %v629_v36  ;;  %v60_v59 = vld [vmem:[%s1125_s0 + $0x140] sm:$0xff]  ;;  %v61_v60 = vld [vmem:[%s1125_s0 + $0x148] sm:$0xff]  ;;  %v47_v62 = vld [vmem:[%s1125_s0 + $0xd8] sm:$0xff]  ;;  %v637_v1 = vpack.c.bf16 %v29_v53, %v28_v52 }
   0xf   :  { %662 = vmatpush3.bf16.msra.mxu1 %v661_v37  ;;  %632 = vmatprep.subr.bf16.mxu0 %v631_v41  ;;  %v78_v63 = vld [vmem:[%s1125_s0 + $0x1d0] sm:$0xff]  ;;  %v79_v0 = vld [vmem:[%s1125_s0 + $0x1d8] sm:$0xff]  ;;  %v669_v2 = vpack.c.bf16 %v61_v60, %v60_v59  ;;  %v639_v8 = vpack.c.bf16 %v47_v62, %v46_v61  ;;  %v48_v11 = vld [vmem:[%s1125_s0 + $0xe0] sm:$0xff] }
  0x10   :  { %664 = vmatprep.subr.bf16.mxu1 %v663_v42  ;;  %v30_v3 = vld [vmem:[%s1125_s0 + $0x50] sm:$0xff]  ;;  %v31_v4 = vld [vmem:[%s1125_s0 + $0x58] sm:$0xff]  ;;  %v671_v9 = vpack.c.bf16 %v79_v0, %v78_v63  ;;  %v49_v12 = vld [vmem:[%s1125_s0 + $0xe8] sm:$0xff]  ;;  %v762_v63 = vmov 0.0|0.0  }
  0x11   :  { %v62_v5 = vld [vmem:[%s1125_s0 + $0x150] sm:$0xff]  ;;  %v63_v10 = vld [vmem:[%s1125_s0 + $0x158] sm:$0xff]  ;;  %v80_v13 = vld [vmem:[%s1125_s0 + $0x1e0] sm:$0xff]  ;;  %v641_v19 = vpack.c.bf16 %v31_v4, %v30_v3  ;;  %v643_v26 = vpack.c.bf16 %v49_v12, %v48_v11 }
  0x12   :  { %634 = vmatpush3.bf16.msra.mxu0 %v633_v50  ;;  %v81_v14 = vld [vmem:[%s1125_s0 + $0x1e8] sm:$0xff]  ;;  %v32_v15 = vld [vmem:[%s1125_s0 + $0x60] sm:$0xff]  ;;  %v673_v20 = vpack.c.bf16 %v63_v10, %v62_v5  ;;  %v50_v21 = vld [vmem:[%s1125_s0 + $0xf0] sm:$0xff] }
  0x13   :  { %666 = vmatpush3.bf16.msra.mxu1 %v665_v51  ;;  %636 = vmatprep.subr.bf16.mxu0 %v635_v57  ;;  %v33_v16 = vld [vmem:[%s1125_s0 + $0x68] sm:$0xff]  ;;  %v64_v17 = vld [vmem:[%s1125_s0 + $0x160] sm:$0xff]  ;;  %v51_v22 = vld [vmem:[%s1125_s0 + $0xf8] sm:$0xff]  ;;  %v675_v27 = vpack.c.bf16 %v81_v14, %v80_v13 }
  0x14   :  { %668 = vmatprep.subr.bf16.mxu1 %v667_v58  ;;  %v65_v18 = vld [vmem:[%s1125_s0 + $0x168] sm:$0xff]  ;;  %v82_v23 = vld [vmem:[%s1125_s0 + $0x1f0] sm:$0xff]  ;;  %v83_v24 = vld [vmem:[%s1125_s0 + $0x1f8] sm:$0xff]  ;;  %v645_v31 = vpack.c.bf16 %v33_v16, %v32_v15  ;;  %v647_v38 = vpack.c.bf16 %v51_v22, %v50_v21 }
  0x15   :  { %v725_v28 = vld [vmem:[%s1126_s1] ss:$14 sps:$4 sm:$0xff]   ;;  %v727_v29 = vld [vmem:[%s1126_s1 + $0x1c] ss:$14 sps:$4 sm:$0xff]   ;;  %v729_v30 = vld [vmem:[%s1126_s1 + $0x4] ss:$14 sps:$4 sm:$0xff]   ;;  %v677_v32 = vpack.c.bf16 %v65_v18, %v64_v17  ;;  %v679_v39 = vpack.c.bf16 %v83_v24, %v82_v23 }
  0x16   :  { %638 = vmatpush3.bf16.msra.mxu0 %v637_v1  ;;  %v730_v33 = vld [vmem:[%s1126_s1 + $0x20] ss:$14 sps:$4 sm:$0xff]   ;;  %v136_v35 = vrot.slane %v725_v28, %v963_v25  ;;  %v150_v36 = vrot.slane %v727_v29, %v963_v25  ;;  %v143_v37 = vrot.slane %v729_v30, %v963_v25  ;;  %v35_v40 = vld [vmem:[%s1125_s0 + $0x78] sm:$0xff]  ;;  %v736_v5 = vld [vmem:[%s1126_s1 + $0x28] ss:$14 sps:$4 sm:$0x33]  }
  0x17   :  { %670 = vmatpush3.bf16.msra.mxu1 %v669_v2  ;;  %640 = vmatprep.subr.bf16.mxu0 %v639_v8  ;;  %v34_v34 = vld [vmem:[%s1125_s0 + $0x70] sm:$0xff]  ;;  %v67_v42 = vld [vmem:[%s1125_s0 + $0x178] sm:$0xff]  ;;  %v157_v43 = vrot.slane %v730_v33, %v963_v25  ;;  %v100_v45 = vld [vmem:[%s1125_s0 + $0x280] sm:$0xff]  ;;  %v193_v16 = vrot.slane %v736_v5, %v963_v25 }
  0x18   :  { %672 = vmatprep.subr.bf16.mxu1 %v671_v9  ;;  %v66_v41 = vld [vmem:[%s1125_s0 + $0x170] sm:$0xff]  ;;  %v159_v44 = vcombine.high %v136_v35, %v150_v36  ;;  %v101_v46 = vld [vmem:[%s1125_s0 + $0x288] sm:$0xff]  ;;  %v649_v48 = vpack.c.bf16 %v35_v40, %v34_v34  ;;  %v84_v51 = vld [vmem:[%s1125_s0 + $0x200] sm:$0xff]  ;;  %v158_v55 = vcombine.low %v136_v35, %v150_v36 }
  0x19   :  { %v161_v47 = vcombine.high %v143_v37, %v157_v43  ;;  %v681_v49 = vpack.c.bf16 %v67_v42, %v66_v41  ;;  %v683_v50 = vpack.c.bf16 %v101_v46, %v100_v45  ;;  %v85_v52 = vld [vmem:[%s1125_s0 + $0x208] sm:$0xff]  ;;  %v102_v53 = vld [vmem:[%s1125_s0 + $0x290] sm:$0xff]  ;;  %v103_v54 = vld [vmem:[%s1125_s0 + $0x298] sm:$0xff]  ;;  %v160_v56 = vcombine.low %v143_v37, %v157_v43 }
  0x1a   :  { %642 = vmatpush3.bf16.msra.mxu0 %v641_v19  ;;  %270 = vmatprep.mubr.f32.mxu0 %v159_v44  ;;  %v685_v57 = vpack.c.bf16 %v85_v52, %v84_v51  ;;  %v86_v58 = vld [vmem:[%s1125_s0 + $0x210] sm:$0xff]  ;;  %v687_v59 = vpack.c.bf16 %v103_v54, %v102_v53  ;;  %v87_v60 = vld [vmem:[%s1125_s0 + $0x218] sm:$0xff]  ;;  %v104_v61 = vld [vmem:[%s1125_s0 + $0x2a0] sm:$0xff] }
  0x1b   :  { %674 = vmatpush3.bf16.msra.mxu1 %v673_v20  ;;  %644 = vmatprep.subr.bf16.mxu0 %v643_v26  ;;  %v105_v62 = vld [vmem:[%s1125_s0 + $0x2a8] sm:$0xff]  ;;  %v88_v0 = vld [vmem:[%s1125_s0 + $0x220] sm:$0xff]  ;;  %v689_v3 = vpack.c.bf16 %v87_v60, %v86_v58  ;;  %v106_v13 = vld [vmem:[%s1125_s0 + $0x2b0] sm:$0xff] }
  0x1c   :  { %676 = vmatprep.subr.bf16.mxu1 %v675_v27  ;;  %340 = vmatprep.mubr.f32.mxu1 %v161_v47  ;;  %v731_v1 = vld [vmem:[%s1126_s1 + $0x8] ss:$14 sps:$4 sm:$0xff]   ;;  %v734_v2 = vld [vmem:[%s1126_s1 + $0x24] ss:$14 sps:$4 sm:$0xff]   ;;  %v691_v7 = vpack.c.bf16 %v105_v62, %v104_v61 }
  0x1d   :  { %v733_v4 = vld [vmem:[%s1126_s1 + $0xc] ss:$14 sps:$4 sm:$0x33]   ;;  %v172_v9 = vrot.slane %v731_v1, %v963_v25  ;;  %v186_v10 = vrot.slane %v734_v2, %v963_v25  ;;  %v116_v11 = vld [vmem:[%s1125_s0 + $0x300] sm:$0xff]  ;;  %v90_v22 = vld [vmem:[%s1125_s0 + $0x230] sm:$0xff] }
  0x1e   :  { %646 = vmatpush3.bf16.msra.mxu0 %v645_v31  ;;  %v89_v8 = vld [vmem:[%s1125_s0 + $0x228] sm:$0xff]  ;;  %v107_v14 = vld [vmem:[%s1125_s0 + $0x2b8] sm:$0xff]  ;;  %v179_v15 = vrot.slane %v733_v4, %v963_v25  ;;  %v108_v24 = vld [vmem:[%s1125_s0 + $0x2c0] sm:$0xff] }
  0x1f   :  { %678 = vmatpush3.bf16.msra.mxu1 %v677_v32  ;;  %648 = vmatprep.subr.bf16.mxu0 %v647_v38  ;;  %v117_v12 = vld [vmem:[%s1125_s0 + $0x308] sm:$0xff]  ;;  %v195_v18 = vcombine.high %v172_v9, %v186_v10  ;;  %v693_v19 = vpack.c.bf16 %v89_v8, %v88_v0  ;;  %v695_v21 = vpack.c.bf16 %v107_v14, %v106_v13  ;;  %v91_v23 = vld [vmem:[%s1125_s0 + $0x238] sm:$0xff]  ;;  %v92_v28 = vld [vmem:[%s1125_s0 + $0x240] sm:$0xff] }
  0x20   :  { %680 = vmatprep.subr.bf16.mxu1 %v679_v39  ;;  %v716_v17 = vpack.c.bf16 %v117_v12, %v116_v11  ;;  %v196_v20 = vcombine.low %v179_v15, %v193_v16  ;;  %v109_v25 = vld [vmem:[%s1125_s0 + $0x2c8] sm:$0xff]  ;;  %v697_v26 = vpack.c.bf16 %v91_v23, %v90_v22  ;;  %v110_v30 = vld [vmem:[%s1125_s0 + $0x2d0] sm:$0xff]  ;;  %v111_v31 = vld [vmem:[%s1125_s0 + $0x2d8] sm:$0xff] }
  0x21   :  { %v699_v27 = vpack.c.bf16 %v109_v25, %v108_v24  ;;  %v93_v29 = vld [vmem:[%s1125_s0 + $0x248] sm:$0xff]  ;;  %v703_v33 = vpack.c.bf16 %v111_v31, %v110_v30  ;;  %v94_v34 = vld [vmem:[%s1125_s0 + $0x250] sm:$0xff]  ;;  %v95_v35 = vld [vmem:[%s1125_s0 + $0x258] sm:$0xff] }
  0x22   :  { %650 = vmatpush3.bf16.msra.mxu0 %v649_v48  ;;  %v701_v32 = vpack.c.bf16 %v93_v29, %v92_v28  ;;  %v112_v36 = vld [vmem:[%s1125_s0 + $0x2e0] sm:$0xff]  ;;  %v113_v37 = vld [vmem:[%s1125_s0 + $0x2e8] sm:$0xff]  ;;  %v705_v38 = vpack.c.bf16 %v95_v35, %v94_v34  ;;  %v114_v42 = vld [vmem:[%s1125_s0 + $0x2f0] sm:$0xff] }
  0x23   :  { %682 = vmatpush3.bf16.msra.mxu1 %v681_v49  ;;  %684 = vmatprep.subr.bf16.mxu0 %v683_v50  ;;  %v707_v39 = vpack.c.bf16 %v113_v37, %v112_v36  ;;  %v96_v40 = vld [vmem:[%s1125_s0 + $0x260] sm:$0xff]  ;;  %v97_v41 = vld [vmem:[%s1125_s0 + $0x268] sm:$0xff]  ;;  %v115_v43 = vld [vmem:[%s1125_s0 + $0x2f8] sm:$0xff]  ;;  %v194_v49 = vcombine.low %v172_v9, %v186_v10 }
  0x24   :  { %715 = vmatprep.subr.bf16.mxu1 %v762_v63  ;;  %v709_v44 = vpack.c.bf16 %v97_v41, %v96_v40  ;;  %v711_v45 = vpack.c.bf16 %v115_v43, %v114_v42  ;;  %v98_v46 = vld [vmem:[%s1125_s0 + $0x270] sm:$0xff]  ;;  %v99_v47 = vld [vmem:[%s1125_s0 + $0x278] sm:$0xff] }
  0x25   :  { %271 = vmatmul.mubr.f32.vlgmr.msra.gmra.mrb[0].mxu0 %v158_v55  ;;  %v713_v48 = vpack.c.bf16 %v99_v47, %v98_v46 }
  0x26   :  { %341 = vmatmul.mubr.f32.vlgmr.msra.gmra.mrb[0].mxu1 %v160_v56  ;;  %686 = vmatpush3.bf16.msra.mxu0 %v685_v57 }
  0x27   :  { %616 = vmatprep.mubr.msk.f32.mxu1 %vm763_vm0, %v764_v6  ;;  %688 = vmatprep.subr.bf16.mxu0 %v687_v59 }
  0x28   :  { %717 = vmatpush3.bf16.msra.mxu1 %v716_v17  ;;  %410 = vmatprep.mubr.f32.mxu0 %v195_v18 }
  0x2a   :  { %690 = vmatpush3.bf16.msra.mxu0 %v689_v3 }
  0x2b   :  { %692 = vmatprep.subr.bf16.mxu0 %v691_v7  ;;  %617 = vmatmul.mubr.msk.f32.vlgmr.msra.gmra.mrb[2].mxu1 %vm203_vm1, %v196_v20 }
  0x2e   :  { %694 = vmatpush3.bf16.msra.mxu0 %v693_v19 }
  0x2f   :  { %696 = vmatprep.subr.bf16.mxu0 %v695_v21 }
  0x32   :  { %698 = vmatpush3.bf16.msra.mxu0 %v697_v26 }
  0x33   :  { %700 = vmatprep.subr.bf16.mxu0 %v699_v27 }
  0x36   :  { %702 = vmatpush3.bf16.msra.mxu0 %v701_v32 }
  0x37   :  { %704 = vmatprep.subr.bf16.mxu0 %v703_v33 }
  0x3a   :  { %706 = vmatpush3.bf16.msra.mxu0 %v705_v38 }
  0x3b   :  { %708 = vmatprep.subr.bf16.mxu0 %v707_v39 }
  0x3e   :  { %710 = vmatpush3.bf16.msra.mxu0 %v709_v44 }
  0x3f   :  { %712 = vmatprep.subr.bf16.mxu0 %v711_v45 }
  0x42   :  { %714 = vmatpush3.bf16.msra.mxu0 %v713_v48 }
  0x45   :  { %411 = vmatmul.mubr.f32.vlgmr.msra.gmra.mrb[2].mxu0 %v194_v49 }
  0xf8   :  { %v536_v50 = vpop.f32.mrb[0].mxu0 }
  0xf9   :  { %v571_v51 = vpop.f32.mrb[0].mxu1  ;;  %v537_v52 = vpop.f32.mrb[1].mxu0 }
  0xfa   :  { %v572_v53 = vpop.f32.mrb[1].mxu1  ;;  %v538_v54 = vadd.f32 %v537_v52, %v536_v50 }
  0xfb   :  { %v573_v55 = vadd.f32 %v572_v53, %v571_v51 }
  0xfd   :  { %v343_v56 = vadd.f32 %v573_v55, %v538_v54 }
  0xfe   :  { %v482_v57 = vpop.f32.mrb[2].mxu1 }
  0xff   :  { %v618_v58 = vpop.f32.mrb[3].mxu1 }
 0x118   :  { %v606_v59 = vpop.f32.mrb[2].mxu0 }
 0x119   :  { %v607_v60 = vpop.f32.mrb[3].mxu0 }
 0x11a   :  { %v608_v61 = vadd.f32 %v607_v60, %v606_v59 }
 0x11c   :  { %v413_v62 = vadd.f32 %v608_v61, %v343_v56 }
 0x11e   :  { %v483_v63 = vadd.f32 %v482_v57, %v413_v62 }
 0x120   :  { %486 = vst.msk [vmem:[#allocation2] sm:$0xff] %vm203_vm1, %v483_v63 }
 0x121   :  { %491 = vsyncadd [#allocation3], 96  ;;  %s765_s0 = smov [#allocation2]  }
 0x122   :  { %s492_s23 = sshll.u32 %s765_s0, 4  ;;  %s493_s23 = int_to_ptr.vmem [resolvable:$true] %s492_s23 }
 0x123   :  { %s737_s24 = scalar_lea.vmem %s493_s23, 32  ;;  %s741_s25 = scalar_lea.vmem %s493_s23, 128 }
 0x124   :  { %p738_p0 = scmp.ne.s32.totalorder %s493_s23, %s737_s24  ;;  %p742_p1 = scmp.lt.s32.totalorder %s493_s23, %s493_s23 }
 0x125   :  { %p743_p2 = scmp.lt.s32.totalorder %s741_s25, %s737_s24 }
 0x127   :  { %p744_p3 = por %p743_p2, %p742_p1 }
 0x129   :  { %p745_p4 = pnand %p744_p3, %p738_p0 }
 0x12b   :  { %748 = shalt.err (!%p745_p4)
}
 0x12c   :  { %s749_s28 = scalar_lea.hbm %s1127_s2, 32 }
 0x12d   :  { %p750_p5 = scmp.ne.s32.totalorder %s1127_s2, %s749_s28  ;;  %p753_p6 = scmp.lt.u32.totalorder %s749_s28, %s1127_s2 }
 0x12f   :  { %p755_p7 = pnand %p753_p6, %p750_p5 }
 0x131   :  { %758 = shalt.err (!%p755_p7)
}
 0x132   :  { %s766_s5 = smov 32   ;;  %s767_s6 = smov 2  }
 0x133   :  { %498 = dma.vmem_to_hbm [thread:$0]  %s493_s23, 32, %s1127_s2, [#allocation3], %s766_s5, %s766_s5, %s767_s6  }
 0x134   :  { %759 = dma.done.wait [#allocation3], 128  }
 0x135   :  { %760 = vsyncadd [#allocation3], 4294967168 }
 0x136   :  { %502 = vsyncpa [#allocation3], 1 }

</bundles_post_ra>
